<compile_context>
chip_gen: v7x
topology: tpu7x:2x2x1
jax: 0.10.0
libtpu: 0.0.40
codegen_flags: <defaults>
</compile_context>

<pallas_src>
import functools

import jax
import jax.numpy as jnp
from jax import lax
from jax.experimental import pallas as pl
from jax.experimental.pallas import tpu as pltpu


def _round_up(x, m):
    return (x + m - 1) // m * m


def _cosine_kernel_1k(img_ref, cn_ref, invi_ref, invc_ref, out_ref):
    """Single K tile: matmul + rank-1 rescale, written straight to out."""
    acc = lax.dot_general(
        img_ref[...], cn_ref[...],
        dimension_numbers=(((1,), (1,)), ((), ())),   # contract dim 1 on both
        preferred_element_type=jnp.float32)
    out_ref[...] = (acc * invi_ref[...] * invc_ref[...]).astype(out_ref.dtype)


def _cosine_kernel_nk(img_ref, cn_ref, invi_ref, invc_ref, out_ref, acc_ref):
    """Multiple K tiles: f32 accumulator across the 'arbitrary' last axis."""
    k = pl.program_id(2)
    part = lax.dot_general(
        img_ref[...], cn_ref[...],
        dimension_numbers=(((1,), (1,)), ((), ())),
        preferred_element_type=jnp.float32)

    @pl.when(k == 0)
    def _():
        acc_ref[...] = part          # direct write; no zero-init pass

    @pl.when(k > 0)
    def _():
        acc_ref[...] += part

    @pl.when(k == pl.num_programs(2) - 1)
    def _():
        out_ref[...] = (acc_ref[...] * invi_ref[...] * invc_ref[...]
                        ).astype(out_ref.dtype)


def cosine_classifier(img, concept, temp=0.05, scale=True, *,
                      block_m=1024, block_n=512, block_k=2048,
                      mxu_dtype=jnp.bfloat16, out_dtype=jnp.float32):
    """img: (bs, emb_dim), concept: (n_class, emb_dim) -> (bs, n_class)."""
    bs, emb_dim = img.shape
    n_class, emb_dim_c = concept.shape
    assert emb_dim == emb_dim_c, "embedding dims must match"

    # --- hoisted norm math, all in f32 (matches F.normalize eps exactly) ---
    img32 = img.astype(jnp.float32)
    cn32 = concept.astype(jnp.float32)
    inv_temp = (1.0 / float(temp)) if scale else 1.0
    eps2 = jnp.float32(1e-24)                      # == (1e-12)**2
    inv_i = lax.rsqrt(jnp.maximum(
        jnp.sum(img32 * img32, axis=-1, keepdims=True), eps2))        # (bs, 1)
    inv_c = lax.rsqrt(jnp.maximum(
        jnp.sum(cn32 * cn32, axis=-1), eps2)) * jnp.float32(inv_temp)  # (n_class,)
    inv_c = inv_c[None, :]                                             # (1, n_class)

    in_dtype = jnp.dtype(mxu_dtype)
    in_bytes = in_dtype.itemsize
    out_bytes = jnp.dtype(out_dtype).itemsize
    smult = 16 if in_bytes == 2 else 8             # bf16 sublane packing

    # --- tile sizes (sublane/lane aligned, clamped to requested blocks) ---
    tm = min(_round_up(bs, smult), _round_up(block_m, smult))
    tn = min(_round_up(n_class, 128), _round_up(block_n, 128))
    tk = min(_round_up(emb_dim, 128), _round_up(block_k, 128))

    # --- per-generation VMEM ceiling (v7x has only 64 MiB physical) ---
    try:
        vmem_cap = int(pltpu.get_tpu_info().vmem_capacity_bytes)
    except Exception:
        vmem_cap = 64 * 1024 * 1024                # v7x-safe fallback
    budget = (vmem_cap * 3) // 4                   # ~25% headroom

    def _vmem_bytes(tm_, tn_, tk_):
        multi_k = _round_up(emb_dim, 128) > tk_
        b = 2 * (tm_ * tk_ + tn_ * tk_) * in_bytes   # double-buffered inputs
        b += 2 * (tm_ + tn_) * 4                     # inv_i / inv_c tiles
        b += 2 * tm_ * tn_ * out_bytes               # double-buffered output
        if multi_k:
            b += tm_ * tn_ * 4                       # f32 accumulator scratch
        return b

    # Shrink guard so oversized user blocks can't blow the budget.
    while _vmem_bytes(tm, tn, tk) > budget:
        if tk > 128 and tk >= max(tn, tm):
            tk = _round_up(tk // 2, 128)
        elif tn > 128 and tn >= tm:
            tn = _round_up(tn // 2, 128)
        elif tm > smult:
            tm = _round_up(tm // 2, smult)
        else:
            break

    bp = _round_up(bs, tm)
    cp = _round_up(n_class, tn)
    dp = _round_up(emb_dim, tk)
    ni, nj, nk = bp // tm, cp // tn, dp // tk

    # --- operand cast + zero padding (benign for norms and dot) ---
    img_in = img32.astype(in_dtype)
    cn_in = cn32.astype(in_dtype)
    if bp != bs or dp != emb_dim:
        img_in = jnp.pad(img_in, ((0, bp - bs), (0, dp - emb_dim)))
    if cp != n_class or dp != emb_dim:
        cn_in = jnp.pad(cn_in, ((0, cp - n_class), (0, dp - emb_dim)))
    if bp != bs:
        inv_i = jnp.pad(inv_i, ((0, bp - bs), (0, 0)))
    if cp != n_class:
        inv_c = jnp.pad(inv_c, ((0, 0), (0, cp - n_class)))

    flops = 2 * bp * cp * dp + 2 * bp * cp
    bytes_accessed = (in_bytes * (bp * dp * nj + cp * dp * ni)
                      + 4 * (bp * nj + cp * ni)
                      + out_bytes * bp * cp)

    # Grid: n_class tiles first so a v7x megacore split shards the dominant
    # (concept) operand rather than duplicating it per TensorCore.
    if nk == 1:
        kernel = _cosine_kernel_1k
        grid = (nj, ni)
        in_specs = [
            pl.BlockSpec((tm, tk), lambda j, i: (i, 0)),   # img
            pl.BlockSpec((tn, tk), lambda j, i: (j, 0)),   # concept
            pl.BlockSpec((tm, 1), lambda j, i: (i, 0)),    # inv_i
            pl.BlockSpec((1, tn), lambda j, i: (0, j)),    # inv_c (temp folded)
        ]
        out_specs = pl.BlockSpec((tm, tn), lambda j, i: (i, j))
        scratch = []
        dims = ("parallel", "parallel")
    else:
        kernel = _cosine_kernel_nk
        grid = (nj, ni, nk)
        in_specs = [
            pl.BlockSpec((tm, tk), lambda j, i, k: (i, k)),
            pl.BlockSpec((tn, tk), lambda j, i, k: (j, k)),
            pl.BlockSpec((tm, 1), lambda j, i, k: (i, 0)),
            pl.BlockSpec((1, tn), lambda j, i, k: (0, j)),
        ]
        out_specs = pl.BlockSpec((tm, tn), lambda j, i, k: (i, j))
        scratch = [pltpu.VMEM((tm, tn), jnp.float32)]
        dims = ("parallel", "parallel", "arbitrary")

    out = pl.pallas_call(
        kernel,
        out_shape=jax.ShapeDtypeStruct((bp, cp), out_dtype),
        grid_spec=pltpu.PrefetchScalarGridSpec(
            num_scalar_prefetch=0,
            grid=grid,
            in_specs=in_specs,
            out_specs=out_specs,
            scratch_shapes=scratch),
        compiler_params=pltpu.CompilerParams(
            dimension_semantics=dims,
            vmem_limit_bytes=int(budget)),
        cost_estimate=pl.CostEstimate(
            flops=int(flops),
            transcendentals=0,
            bytes_accessed=int(bytes_accessed)),
    )(img_in, cn_in, inv_i, inv_c)

    return out[:bs, :n_class]


if __name__ == "__main__":
    key = jax.random.PRNGKey(0)
    k_img, k_concept = jax.random.split(key)

    def ref(img, concept, temp=0.05, scale=True):
        eps = 1e-12
        im = img / jnp.maximum(jnp.linalg.norm(img, axis=-1, keepdims=True), eps)
        cn = concept / jnp.maximum(jnp.linalg.norm(concept, axis=-1, keepdims=True), eps)
        p = im @ cn.T
        return p / temp if scale else p

    # --- small example consistent with the module's forward signature ---
    bs, n_class, emb_dim = 8, 16, 32
    img = jax.random.normal(k_img, (bs, emb_dim), dtype=jnp.float32)
    concept = jax.random.normal(k_concept, (n_class, emb_dim), dtype=jnp.float32)
    expected = ref(img, concept)

    # f32 MXU operands: tight check of the restructured math (single-K path).
    pred_f32 = jax.block_until_ready(
        cosine_classifier(img, concept, mxu_dtype=jnp.float32))
    assert pred_f32.shape == (bs, n_class)
    assert jnp.allclose(pred_f32, expected, atol=1e-3, rtol=1e-3), \
        float(jnp.max(jnp.abs(pred_f32 - expected)))

    # Default bf16 operand DMA (f32 accumulation): ~1e-3-level cosine change.
    pred_bf16 = jax.block_until_ready(cosine_classifier(img, concept))
    assert jnp.allclose(pred_bf16, expected, atol=0.15, rtol=0.02), \
        float(jnp.max(jnp.abs(pred_bf16 - expected)))

    # scale=False path.
    pred_ns = jax.block_until_ready(
        cosine_classifier(img, concept, scale=False, mxu_dtype=jnp.float32))
    assert jnp.allclose(pred_ns, ref(img, concept, scale=False),
                        atol=1e-4, rtol=1e-4)

    # Larger shape on default (single-K, fat-tile) path, with padding.
    bs2, n_class2, emb_dim2 = 40, 300, 640
    k1, k2 = jax.random.split(jax.random.PRNGKey(1))
    img2 = jax.random.normal(k1, (bs2, emb_dim2), dtype=jnp.float32)
    concept2 = jax.random.normal(k2, (n_class2, emb_dim2), dtype=jnp.float32)
    expected2 = ref(img2, concept2)
    pred2 = jax.block_until_ready(cosine_classifier(img2, concept2))
    assert pred2.shape == (bs2, n_class2)
    assert jnp.allclose(pred2, expected2, atol=0.15, rtol=0.02), \
        float(jnp.max(jnp.abs(pred2 - expected2)))

    # Small-block override: exercises the multi-K accumulator kernel and the
    # multi-tile B/C grid (plus padding) with a tight f32 check.
    pred3 = jax.block_until_ready(
        cosine_classifier(img2, concept2, block_m=16, block_n=128, block_k=256,
                          mxu_dtype=jnp.float32))
    assert jnp.allclose(pred3, expected2, atol=1e-3, rtol=1e-3), \
        float(jnp.max(jnp.abs(pred3 - expected2)))

    print("KERNEL_OK")
</pallas_src>

<mosaic_0001>
module attributes {stable_mosaic.version = 11 : i64} {
  func.func @_cosine_kernel_1k(%arg0: i32, %arg1: i32, %arg2: memref<8x128xf32, #tpu.memory_space<vmem>>, %arg3: memref<128x128xf32, #tpu.memory_space<vmem>>, %arg4: memref<8x1xf32, #tpu.memory_space<vmem>>, %arg5: memref<1x128xf32, #tpu.memory_space<vmem>>, %arg6: memref<8x128xf32, #tpu.memory_space<vmem>>) attributes {dimension_semantics = [#tpu.dimension_semantics<parallel>, #tpu.dimension_semantics<parallel>], iteration_bounds = array<i64: 1, 1>, scalar_prefetch = 0 : i64, scratch_operands = 0 : i64, tpu.core_type = #tpu.core_type<tc>, window_params = [{transform_indices = @transform_0, window_bounds = array<i64: 8, 128>}, {transform_indices = @transform_1, window_bounds = array<i64: 128, 128>}, {transform_indices = @transform_2, window_bounds = array<i64: 8, 1>}, {transform_indices = @transform_3, window_bounds = array<i64: 1, 128>}, {transform_indices = @transform_4, window_bounds = array<i64: 8, 128>}]} {
    %c0 = arith.constant 0 : index
    %c0_0 = arith.constant 0 : index
    %0 = vector.load %arg2[%c0, %c0_0] : memref<8x128xf32, #tpu.memory_space<vmem>>, vector<8x128xf32>
    %c0_1 = arith.constant 0 : index
    %c0_2 = arith.constant 0 : index
    %1 = vector.load %arg3[%c0_1, %c0_2] : memref<128x128xf32, #tpu.memory_space<vmem>>, vector<128x128xf32>
    %cst = arith.constant dense<0.000000e+00> : vector<8x128xf32>
    %2 = tpu.matmul %0, %1, %cst {dimension_numbers = #tpu.dot_dimension_numbers<[1], [1], [0], [0], [0, 0, 1, 0], [], []>} : vector<8x128xf32>, vector<128x128xf32>, vector<8x128xf32> -> vector<8x128xf32>
    %c0_3 = arith.constant 0 : index
    %c0_4 = arith.constant 0 : index
    %3 = vector.load %arg4[%c0_3, %c0_4] : memref<8x1xf32, #tpu.memory_space<vmem>>, vector<8x1xf32>
    %4 = vector.broadcast %3 : vector<8x1xf32> to vector<8x128xf32>
    %5 = arith.mulf %2, %4 : vector<8x128xf32>
    %c0_5 = arith.constant 0 : index
    %c0_6 = arith.constant 0 : index
    %6 = vector.load %arg5[%c0_5, %c0_6] : memref<1x128xf32, #tpu.memory_space<vmem>>, vector<1x128xf32>
    %7 = vector.broadcast %6 : vector<1x128xf32> to vector<8x128xf32>
    %8 = arith.mulf %5, %7 : vector<8x128xf32>
    %c0_7 = arith.constant 0 : index
    %c0_8 = arith.constant 0 : index
    %9 = vector.load %arg6[%c0_7, %c0_8] : memref<8x128xf32, #tpu.memory_space<vmem>>, vector<8x128xf32>
    tpu.vector_store %arg6[%c0_7, %c0_8], %8 {strides = array<i32>} : memref<8x128xf32, #tpu.memory_space<vmem>>, vector<8x128xf32>,
    return
  }
  func.func @transform_0(%arg0: i32, %arg1: i32) -> (i32, i32) {
    %c0_i32 = arith.constant 0 : i32
    %c0_i32_0 = arith.constant 0 : i32
    return %arg1, %c0_i32 : i32, i32
  }
  func.func @transform_1(%arg0: i32, %arg1: i32) -> (i32, i32) {
    %c0_i32 = arith.constant 0 : i32
    %c0_i32_0 = arith.constant 0 : i32
    return %arg0, %c0_i32 : i32, i32
  }
  func.func @transform_2(%arg0: i32, %arg1: i32) -> (i32, i32) {
    %c0_i32 = arith.constant 0 : i32
    %c0_i32_0 = arith.constant 0 : i32
    return %arg1, %c0_i32 : i32, i32
  }
  func.func @transform_3(%arg0: i32, %arg1: i32) -> (i32, i32) {
    %c0_i32 = arith.constant 0 : i32
    %c0_i32_0 = arith.constant 0 : i32
    return %c0_i32, %arg0 : i32, i32
  }
  func.func @transform_4(%arg0: i32, %arg1: i32) -> (i32, i32) {
    %c0_i32 = arith.constant 0 : i32
    return %arg1, %arg0 : i32, i32
  }
}

</mosaic_0001>

<bundles_post_ra>
// kernel: tpu_custom_call.1
= control target key start
LH: loop header
LB: loop body
LE: loop exit
PB: predicated region body
PF: predicated region fallthrough
CT: control target
= control target key end

     0   :  { %9 = vsyncpa [#allocation3], 0  ;;  %s350_s0 = inlined_call_operand.vmem [shape: f32[8,128], index: 0, kind: input, shape index: {}]   ;;  %s351_s1 = inlined_call_operand.hbm [shape: f32[128,128], index: 1, kind: input, shape index: {}]   ;;  %s352_s2 = inlined_call_operand.vmem [shape: f32[8,1], index: 2, kind: input, shape index: {}]   ;;  %s353_s3 = inlined_call_operand.vmem [shape: f32[1,128], index: 3, kind: input, shape index: {}]   ;;  %s354_s4 = inlined_call_operand.hbm [shape: f32[8,128], index: 4, kind: output, shape index: {}]  }
   0x1   :  { %10 = vsyncpa [#allocation4], 0  ;;  %s284_s15 = smov [#allocation2]   ;;  %s236_s19 = scalar_lea.hbm %s351_s1, 2048 }
   0x2   :  { %s18_s16 = sshll.u32 %s284_s15, 4  ;;  %p237_p0 = scmp.ne.s32.totalorder %s351_s1, %s236_s19  ;;  %s19_s16 = int_to_ptr.vmem [resolvable:$true] %s18_s16 }
   0x3   :  { %p240_p1 = scmp.lt.u32.totalorder %s236_s19, %s351_s1 }
   0x5   :  { %p242_p2 = pnand %p240_p1, %p237_p0 }
   0x7   :  { %245 = shalt.err (!%p242_p2)
}
   0x8   :  { %s246_s24 = scalar_lea.vmem %s19_s16, 2048  ;;  %p251_p4 = scmp.lt.s32.totalorder %s19_s16, %s19_s16 }
   0x9   :  { %p247_p3 = scmp.ne.s32.totalorder %s19_s16, %s246_s24  ;;  %p252_p5 = scmp.lt.s32.totalorder %s246_s24, %s246_s24 }
   0xb   :  { %p253_p6 = por %p252_p5, %p251_p4 }
   0xd   :  { %p254_p7 = pnand %p253_p6, %p247_p3 }
   0xf   :  { %257 = shalt.err (!%p254_p7)
}
  0x10   :  { %s285_s25 = smov 128   ;;  %s286_s26 = smov 8  }
  0x11   :  { %24 = dma.hbm_to_vmem [thread:$0]  %s351_s1, 2048, %s19_s16, [#allocation3], %s285_s25, %s285_s25, %s286_s26  }
  0x12   :  { %280 = dma.done.wait [#allocation3], 2048  }
  0x13   :  { %281 = vsyncadd [#allocation3], 4294965248  ;;  %v287_v0 = vmov 0.0|0.0   ;;  %vm288_vm0 = vmmov 0   ;;  %v289_v1 = vmov 0.0   ;;  %v290_v2 = vmov 0  }
  0x14   :  { %203 = vmatprep.subr.bf16.mxu0 %v287_v0  ;;  %200 = vmatprep.mubr.msk.f32.mxu0 %vm288_vm0, %v289_v1  ;;  %v33_v3 = vld [vmem:[#allocation2] sm:$0xff]  ;;  %v34_v4 = vld [vmem:[#allocation2 + $0x8] sm:$0xff]  ;;  %v35_v6 = vld [vmem:[#allocation2 + $0x10] sm:$0xff]  ;;  %s291_s7 = smov [#allocation5]  }
  0x15   :  { %235 = vset.pattern.permute.xlu0 %v290_v2  ;;  %v204_v5 = vpack.c.bf16 %v34_v4, %v33_v3  ;;  %v36_v7 = vld [vmem:[#allocation2 + $0x18] sm:$0xff]  ;;  %v119_v8 = vld [vmem:[%s352_s2] sm:$0xff]  ;;  %v38_v11 = vld [vmem:[#allocation2 + $0x28] sm:$0xff]  ;;  %s141_s8 = sshll.u32 %s291_s7, 4  ;;  %s142_s8 = int_to_ptr.vmem [resolvable:$true] %s141_s8 }
  0x16   :  { %122 = vperm.xlu0 %235, %v119_v8   ;;  %v207_v9 = vpack.c.bf16 %v36_v7, %v35_v6  ;;  %v37_v10 = vld [vmem:[#allocation2 + $0x20] sm:$0xff]  ;;  %v39_v13 = vld [vmem:[#allocation2 + $0x30] sm:$0xff]  ;;  %v40_v14 = vld [vmem:[#allocation2 + $0x38] sm:$0xff]  ;;  %s258_s9 = scalar_lea.vmem %s142_s8, 128  ;;  %p263_p9 = scmp.lt.s32.totalorder %s142_s8, %s142_s8 }
  0x17   :  { %205 = vmatpush3.bf16.xpose.msra.mxu0 %v204_v5  ;;  %v210_v12 = vpack.c.bf16 %v38_v11, %v37_v10  ;;  %v213_v15 = vpack.c.bf16 %v40_v14, %v39_v13  ;;  %v41_v16 = vld [vmem:[#allocation2 + $0x40] sm:$0xff]  ;;  %v42_v17 = vld [vmem:[#allocation2 + $0x48] sm:$0xff]  ;;  %v43_v19 = vld [vmem:[#allocation2 + $0x50] sm:$0xff]  ;;  %p259_p8 = scmp.ne.s32.totalorder %s142_s8, %s258_s9  ;;  %p264_p10 = scmp.lt.s32.totalorder %s258_s9, %s258_s9 }
  0x18   :  { %206 = vmatprep.subr.bf16.mxu0 %v287_v0  ;;  %v216_v18 = vpack.c.bf16 %v42_v17, %v41_v16  ;;  %v44_v20 = vld [vmem:[#allocation2 + $0x58] sm:$0xff]  ;;  %v45_v22 = vld [vmem:[#allocation2 + $0x60] sm:$0xff]  ;;  %v46_v23 = vld [vmem:[#allocation2 + $0x68] sm:$0xff] }
  0x19   :  { %v219_v21 = vpack.c.bf16 %v44_v20, %v43_v19  ;;  %v222_v24 = vpack.c.bf16 %v46_v23, %v45_v22  ;;  %v47_v25 = vld [vmem:[#allocation2 + $0x70] sm:$0xff]  ;;  %v48_v26 = vld [vmem:[#allocation2 + $0x78] sm:$0xff]  ;;  %v32_v28 = vld [vmem:[%s350_s0] sm:$0xff]  ;;  %p265_p11 = por %p264_p10, %p263_p9 }
  0x1a   :  { %v225_v27 = vpack.c.bf16 %v48_v26, %v47_v25  ;;  %v150_v31 = vld [vmem:[%s353_s3] ss:$0 sm:$0xff] }
  0x1b   :  { %p266_p12 = pnand %p265_p11, %p259_p8 }
  0x1f   :  { %208 = vmatpush3.bf16.xpose.msra.mxu0 %v207_v9 }
  0x20   :  { %209 = vmatprep.subr.bf16.mxu0 %v287_v0 }
  0x27   :  { %211 = vmatpush3.bf16.xpose.msra.mxu0 %v210_v12 }
  0x28   :  { %212 = vmatprep.subr.bf16.mxu0 %v287_v0 }
  0x2f   :  { %214 = vmatpush3.bf16.xpose.msra.mxu0 %v213_v15 }
  0x30   :  { %215 = vmatprep.subr.bf16.mxu0 %v287_v0 }
  0x37   :  { %217 = vmatpush3.bf16.xpose.msra.mxu0 %v216_v18 }
  0x38   :  { %218 = vmatprep.subr.bf16.mxu0 %v287_v0 }
  0x3f   :  { %220 = vmatpush3.bf16.xpose.msra.mxu0 %v219_v21 }
  0x40   :  { %221 = vmatprep.subr.bf16.mxu0 %v287_v0 }
  0x47   :  { %223 = vmatpush3.bf16.xpose.msra.mxu0 %v222_v24 }
  0x48   :  { %224 = vmatprep.subr.bf16.mxu0 %v287_v0 }
  0x4f   :  { %226 = vmatpush3.bf16.xpose.msra.mxu0 %v225_v27 }
  0x56   :  { %201 = vmatmul.mubr.f32.vlgmr.msra.gmra.mrb[0].mxu0 %v32_v28 }
  0x95   :  { %v123_v29 = vpop.permute.xlu0 %122 }
 0x129   :  { %v115_v30 = vpop.f32.mrb[0].mxu0 }
 0x12a   :  { %v125_v32 = vmul.f32 %v123_v29, %v115_v30  ;;  %v202_v33 = vpop.f32.mrb[1].mxu0 }
 0x12c   :  { %v133_v34 = vmul.f32 %v150_v31, %v125_v32 }
 0x12e   :  { %134 = vst [vmem:[#allocation5] sm:$0xff] %v133_v34 }
 0x12f   :  { %269 = shalt.err (!%p266_p12)
}
 0x130   :  { %s270_s11 = scalar_lea.hbm %s354_s4, 128 }
 0x131   :  { %p271_p13 = scmp.ne.s32.totalorder %s354_s4, %s270_s11  ;;  %p274_p0 = scmp.lt.u32.totalorder %s270_s11, %s354_s4 }
 0x133   :  { %p276_p1 = pnand %p274_p0, %p271_p13 }
 0x135   :  { %279 = shalt.err (!%p276_p1)
}
 0x136   :  { %144 = dma.vmem_to_hbm [thread:$0]  %s142_s8, 128, %s354_s4, [#allocation4]  }
 0x137   :  { %282 = dma.done.wait [#allocation4], 128  }
 0x138   :  { %283 = vsyncadd [#allocation4], 4294967168 }
 0x139   :  { %148 = vsyncpa [#allocation3], 1 }
 0x13a   :  { %149 = vsyncpa [#allocation4], 1 }

</bundles_post_ra>
